<compile_context>
chip_gen: v6e
topology: v6e:2x2x1
jax: 0.10.0
libtpu: 0.0.40
codegen_flags: <defaults>
</compile_context>

<pallas_src>
import jax
import jax.numpy as jnp
from jax import lax
from jax.experimental import pallas as pl
from jax.experimental.pallas import tpu as pltpu


def _conv_block_kernel(p_ref, w_ref, b_ref, o_ref):
    """Fused conv-matmul + 2x2 max-pool + bias + sigmoid.

    p_ref: (4, Kpad, Nt)  im2col columns, one 2x2-pool quadrant per leading
                          index; Nt = Bt*Ph*Pw pooled output positions.
    w_ref: (Cout, Kpad)   conv weights as a channel-major slab (K zero-padded).
    b_ref: (Cout, 1)      conv bias (broadcast along lanes).
    o_ref: (Cout, Nt)     pooled + activated output, channel-major, lane-dense.
    """
    w = w_ref[...]
    # MaxPool2d(2,2) == running max of the four quadrant conv results; the
    # per-channel bias is constant w.r.t. the max, so it is added once after.
    acc = jnp.dot(w, p_ref[0], preferred_element_type=jnp.float32)
    for q in range(1, 4):  # fixed 4-way unroll: one MXU dot + one VPU max each
        acc = jnp.maximum(
            acc, jnp.dot(w, p_ref[q], preferred_element_type=jnp.float32))
    acc = acc + b_ref[...].astype(jnp.float32)
    # sigmoid(x) = 0.5*tanh(0.5*x) + 0.5 : single EUP push, full f32 accuracy.
    o_ref[...] = (0.5 * jnp.tanh(0.5 * acc) + 0.5).astype(o_ref.dtype)


def _vmem_capacity_bytes():
    try:
        return int(pltpu.get_tpu_info().vmem_capacity_bytes)
    except Exception:
        return 64 * 1024 * 1024  # conservative fallback: v7x physical VMEM


def _vmem_limit_bytes():
    cap = _vmem_capacity_bytes()
    # 96 MiB on 128 MiB parts (v5e/v6e), 48 MiB on 64 MiB v7x — generous but
    # with headroom for compiler-internal scratch.
    return min(96 * 1024 * 1024, (cap * 3) // 4)


def _pick_block_b(B, Ph, Pw, Kpad, Cout, vmem_budget_bytes):
    """Largest batch-block Bt that
       (a) divides B,
       (b) keeps the block's last dim (Bt*Ph*Pw) 128-lane aligned, or uses
           Bt == B (block == full array, always a legal BlockSpec),
       (c) fits double-buffered in/out blocks plus f32 intermediates in VMEM,
       preferring >= 2 grid steps so both v7x TensorCores get work (the extra
       step costs ~0.35 us, noise on single-TC v5e/v6e)."""
    phpw = Ph * Pw
    lane = 128
    bpe = 4  # float32
    per_image = bpe * (
        2 * (4 * Kpad * phpw)          # im2col block (4 quadrants), double-buffered
        + 2 * (Cout * phpw)            # output block, double-buffered
        + 3 * Cout * max(phpw, lane))  # acc / quadrant product / epilogue temps (lane-padded)
    fixed = bpe * 2 * (Cout * Kpad + Cout * lane) + (1 << 20)  # weights+bias buffers + slack
    max_bt = max(1, (vmem_budget_bytes - fixed) // per_image)

    def legal(bt):
        return B % bt == 0 and ((bt * phpw) % lane == 0 or bt == B)

    fallback = None
    for bt in range(min(B, max_bt), 0, -1):
        if legal(bt):
            if fallback is None:
                fallback = bt
            if B // bt >= 2:
                return bt
    return fallback if fallback is not None else B


def _im2col_pool_quadrants(x_nchw, KH, KW, stride, padding, Ph, Pw, Kpad):
    """Channel-major, pool-aware im2col (wrapper-side glue).

    Returns (4, Kpad, B*Ph*Pw) float32: for each of the four positions of the
    2x2 max-pool window, the im2col column (K = KH*KW*Cin ordered (kh,kw,ci),
    zero-padded to Kpad) of the conv output landing at pooled position
    (b, ph, pw).  Columns are ordered b-major, then (ph, pw) row-major.
    """
    B, Cin, H, W = x_nchw.shape
    K = KH * KW * Cin
    x_nhwc = jnp.transpose(x_nchw, (0, 2, 3, 1))
    x_pad = jnp.pad(x_nhwc,
                    ((0, 0), (padding, padding), (padding, padding), (0, 0)))
    quads = []
    for hp in range(2):
        for wp in range(2):
            taps = []
            for kh in range(KH):
                for kw in range(KW):
                    r0 = hp * stride + kh
                    c0 = wp * stride + kw
                    taps.append(
                        x_pad[:, r0:r0 + 2 * stride * (Ph - 1) + 1:2 * stride,
                                 c0:c0 + 2 * stride * (Pw - 1) + 1:2 * stride, :])
            q = jnp.concatenate(taps, axis=-1)                     # (B, Ph, Pw, K)
            q = jnp.transpose(q, (3, 0, 1, 2)).reshape(K, B * Ph * Pw)
            quads.append(q)
    pat = jnp.stack(quads, axis=0)                                 # (4, K, B*Ph*Pw)
    if Kpad > K:
        pat = jnp.pad(pat, ((0, 0), (0, Kpad - K), (0, 0)))
    return pat.astype(jnp.float32)


def conv_block_forward(x_nchw, weight_oihw, bias, *, stride=1, padding=0):
    """ConvBlock.forward: sigmoid(maxpool2x2(conv2d(x))).

    x_nchw:      (B, Cin, H, W)      float32
    weight_oihw: (Cout, Cin, KH, KW) float32
    bias:        (Cout,)             float32
    returns:     (B, Cout, Ho//2, Wo//2) float32 (NCHW, like PyTorch)
    """
    B, Cin, H, W = x_nchw.shape
    Cout, _, KH, KW = weight_oihw.shape

    Ho = (H + 2 * padding - KH) // stride + 1
    Wo = (W + 2 * padding - KW) // stride + 1
    Ph, Pw = Ho // 2, Wo // 2
    K = KH * KW * Cin
    Kpad = ((K + 127) // 128) * 128
    PhPw = Ph * Pw

    # ---- wrapper glue (plain JAX): layout change, padding, im2col ---------
    patches = _im2col_pool_quadrants(x_nchw, KH, KW, stride, padding, Ph, Pw, Kpad)
    w2d = jnp.transpose(weight_oihw, (0, 2, 3, 1)).reshape(Cout, K)   # (kh,kw,ci) order
    w2d = jnp.pad(w2d, ((0, 0), (0, Kpad - K))).astype(jnp.float32)
    b2 = bias.reshape(Cout, 1).astype(jnp.float32)

    vmem_limit = _vmem_limit_bytes()
    Bt = _pick_block_b(B, Ph, Pw, Kpad, Cout, vmem_limit)
    Nt = Bt * PhPw
    grid = (B // Bt,)

    cost = pl.CostEstimate(
        flops=2 * B * Ho * Wo * K * Cout,
        transcendentals=B * Cout * PhPw,
        bytes_accessed=4 * (patches.size + w2d.size + b2.size + Cout * B * PhPw))

    out_cm = pl.pallas_call(
        _conv_block_kernel,
        out_shape=jax.ShapeDtypeStruct((Cout, B * PhPw), x_nchw.dtype),
        grid_spec=pltpu.PrefetchScalarGridSpec(
            num_scalar_prefetch=0,
            grid=grid,
            in_specs=[
                pl.BlockSpec((4, Kpad, Nt), lambda i: (0, 0, i)),
                pl.BlockSpec((Cout, Kpad), lambda i: (0, 0)),
                pl.BlockSpec((Cout, 1), lambda i: (0, 0)),
            ],
            out_specs=pl.BlockSpec((Cout, Nt), lambda i: (0, i)),
        ),
        compiler_params=pltpu.CompilerParams(
            dimension_semantics=("parallel",),
            vmem_limit_bytes=vmem_limit),
        cost_estimate=cost,
    )(patches, w2d, b2)

    # Kernel output is channel-major (Cout, B, Ph, Pw) flattened on lanes; the
    # final NCHW view is wrapper-side layout plumbing (lane-dense out stores in
    # the kernel beat a native-NCHW 64-lane masked store for this tile size).
    return jnp.transpose(out_cm.reshape(Cout, B, Ph, Pw), (1, 0, 2, 3))


def _reference(x_nchw, weight_oihw, bias, *, stride, padding):
    conv = jax.lax.conv_general_dilated(
        x_nchw, weight_oihw,
        window_strides=(stride, stride),
        padding=[(padding, padding), (padding, padding)],
        dimension_numbers=("NCHW", "OIHW", "NCHW"))
    conv = conv + bias[None, :, None, None]
    pooled = jax.lax.reduce_window(
        conv, -jnp.inf, jax.lax.max,
        window_dimensions=(1, 1, 2, 2),
        window_strides=(1, 1, 2, 2),
        padding="VALID")
    return jax.nn.sigmoid(pooled)


if __name__ == "__main__":
    # ConvBlock(in_channels=4, out_channels=8, kernel_size=5, stride=1, padding=2)
    B, Cin, H, W = 2, 4, 16, 16
    Cout, KH, KW = 8, 5, 5
    stride, padding = 1, 2

    key = jax.random.PRNGKey(0)
    k_w, k_b, k_x = jax.random.split(key, 3)

    # Deterministic init matching nn.Conv2d's U(-1/sqrt(fan_in), 1/sqrt(fan_in)).
    fan_in = Cin * KH * KW
    bound = 1.0 / float(fan_in) ** 0.5
    weight = jax.random.uniform(k_w, (Cout, Cin, KH, KW), jnp.float32, -bound, bound)
    bias = jax.random.uniform(k_b, (Cout,), jnp.float32, -bound, bound)
    x = jax.random.normal(k_x, (B, Cin, H, W), jnp.float32)

    out = jax.block_until_ready(
        conv_block_forward(x, weight, bias, stride=stride, padding=padding))
    ref = jax.block_until_ready(
        _reference(x, weight, bias, stride=stride, padding=padding))

    assert out.shape == (B, Cout, H // 2, W // 2), out.shape
    if not jnp.allclose(out, ref, atol=1e-5, rtol=1e-5):
        raise RuntimeError("Pallas ConvBlock output mismatch vs JAX reference")

    print("KERNEL_OK")
</pallas_src>

<mosaic_0001>
module attributes {stable_mosaic.version = 11 : i64} {
  func.func @_conv_block_kernel(%arg0: i32, %arg1: memref<4x128x128xf32, #tpu.memory_space<vmem>>, %arg2: memref<8x128xf32, #tpu.memory_space<vmem>>, %arg3: memref<8x1xf32, #tpu.memory_space<vmem>>, %arg4: memref<8x128xf32, #tpu.memory_space<vmem>>) attributes {dimension_semantics = [#tpu.dimension_semantics<parallel>], iteration_bounds = array<i64: 1>, scalar_prefetch = 0 : i64, scratch_operands = 0 : i64, tpu.core_type = #tpu.core_type<tc>, window_params = [{transform_indices = @transform_0, window_bounds = array<i64: 4, 128, 128>}, {pipeline_mode = #tpu.pipeline_mode<synchronous>, transform_indices = @transform_1, window_bounds = array<i64: 8, 128>}, {pipeline_mode = #tpu.pipeline_mode<synchronous>, transform_indices = @transform_2, window_bounds = array<i64: 8, 1>}, {transform_indices = @transform_3, window_bounds = array<i64: 8, 128>}]} {
    %c0 = arith.constant 0 : index
    %c0_0 = arith.constant 0 : index
    %0 = vector.load %arg2[%c0, %c0_0] : memref<8x128xf32, #tpu.memory_space<vmem>>, vector<8x128xf32>
    %c0_1 = arith.constant 0 : index
    %c0_2 = arith.constant 0 : index
    %c0_3 = arith.constant 0 : index
    %1 = vector.load %arg1[%c0_1, %c0_2, %c0_3] : memref<4x128x128xf32, #tpu.memory_space<vmem>>, vector<1x128x128xf32>
    %2 = vector.shape_cast %1 : vector<1x128x128xf32> to vector<128x128xf32>
    %cst = arith.constant dense<0.000000e+00> : vector<8x128xf32>
    %3 = tpu.matmul %0, %2, %cst {dimension_numbers = #tpu.dot_dimension_numbers<[1], [0], [0], [1], [0, 0, 1, 1], [], []>} : vector<8x128xf32>, vector<128x128xf32>, vector<8x128xf32> -> vector<8x128xf32>
    %c1 = arith.constant 1 : index
    %c0_4 = arith.constant 0 : index
    %c0_5 = arith.constant 0 : index
    %4 = vector.load %arg1[%c1, %c0_4, %c0_5] : memref<4x128x128xf32, #tpu.memory_space<vmem>>, vector<1x128x128xf32>
    %5 = vector.shape_cast %4 : vector<1x128x128xf32> to vector<128x128xf32>
    %cst_6 = arith.constant dense<0.000000e+00> : vector<8x128xf32>
    %6 = tpu.matmul %0, %5, %cst_6 {dimension_numbers = #tpu.dot_dimension_numbers<[1], [0], [0], [1], [0, 0, 1, 1], [], []>} : vector<8x128xf32>, vector<128x128xf32>, vector<8x128xf32> -> vector<8x128xf32>
    %7 = arith.maximumf %3, %6 : vector<8x128xf32>
    %c2 = arith.constant 2 : index
    %c0_7 = arith.constant 0 : index
    %c0_8 = arith.constant 0 : index
    %8 = vector.load %arg1[%c2, %c0_7, %c0_8] : memref<4x128x128xf32, #tpu.memory_space<vmem>>, vector<1x128x128xf32>
    %9 = vector.shape_cast %8 : vector<1x128x128xf32> to vector<128x128xf32>
    %cst_9 = arith.constant dense<0.000000e+00> : vector<8x128xf32>
    %10 = tpu.matmul %0, %9, %cst_9 {dimension_numbers = #tpu.dot_dimension_numbers<[1], [0], [0], [1], [0, 0, 1, 1], [], []>} : vector<8x128xf32>, vector<128x128xf32>, vector<8x128xf32> -> vector<8x128xf32>
    %11 = arith.maximumf %7, %10 : vector<8x128xf32>
    %c3 = arith.constant 3 : index
    %c0_10 = arith.constant 0 : index
    %c0_11 = arith.constant 0 : index
    %12 = vector.load %arg1[%c3, %c0_10, %c0_11] : memref<4x128x128xf32, #tpu.memory_space<vmem>>, vector<1x128x128xf32>
    %13 = vector.shape_cast %12 : vector<1x128x128xf32> to vector<128x128xf32>
    %cst_12 = arith.constant dense<0.000000e+00> : vector<8x128xf32>
    %14 = tpu.matmul %0, %13, %cst_12 {dimension_numbers = #tpu.dot_dimension_numbers<[1], [0], [0], [1], [0, 0, 1, 1], [], []>} : vector<8x128xf32>, vector<128x128xf32>, vector<8x128xf32> -> vector<8x128xf32>
    %15 = arith.maximumf %11, %14 : vector<8x128xf32>
    %c0_13 = arith.constant 0 : index
    %c0_14 = arith.constant 0 : index
    %16 = vector.load %arg3[%c0_13, %c0_14] : memref<8x1xf32, #tpu.memory_space<vmem>>, vector<8x1xf32>
    %17 = vector.broadcast %16 : vector<8x1xf32> to vector<8x128xf32>
    %18 = arith.addf %15, %17 : vector<8x128xf32>
    %cst_15 = arith.constant 5.000000e-01 : f32
    %19 = vector.broadcast %cst_15 : f32 to vector<8x128xf32>
    %20 = arith.mulf %19, %18 : vector<8x128xf32>
    %21 = math.tanh %20 : vector<8x128xf32>
    %cst_16 = arith.constant 5.000000e-01 : f32
    %22 = vector.broadcast %cst_16 : f32 to vector<8x128xf32>
    %23 = arith.mulf %22, %21 : vector<8x128xf32>
    %cst_17 = arith.constant 5.000000e-01 : f32
    %24 = vector.broadcast %cst_17 : f32 to vector<8x128xf32>
    %25 = arith.addf %23, %24 : vector<8x128xf32>
    %c0_18 = arith.constant 0 : index
    %c0_19 = arith.constant 0 : index
    %26 = vector.load %arg4[%c0_18, %c0_19] : memref<8x128xf32, #tpu.memory_space<vmem>>, vector<8x128xf32>
    tpu.vector_store %arg4[%c0_18, %c0_19], %25 {strides = array<i32>} : memref<8x128xf32, #tpu.memory_space<vmem>>, vector<8x128xf32>,
    return
  }
  func.func @transform_0(%arg0: i32) -> (i32, i32, i32) {
    %c0_i32 = arith.constant 0 : i32
    %c0_i32_0 = arith.constant 0 : i32
    %c0_i32_1 = arith.constant 0 : i32
    return %c0_i32, %c0_i32_0, %arg0 : i32, i32, i32
  }
  func.func @transform_1(%arg0: i32) -> (i32, i32) {
    %c0_i32 = arith.constant 0 : i32
    %c0_i32_0 = arith.constant 0 : i32
    %c0_i32_1 = arith.constant 0 : i32
    return %c0_i32, %c0_i32_0 : i32, i32
  }
  func.func @transform_2(%arg0: i32) -> (i32, i32) {
    %c0_i32 = arith.constant 0 : i32
    %c0_i32_0 = arith.constant 0 : i32
    %c0_i32_1 = arith.constant 0 : i32
    return %c0_i32, %c0_i32_0 : i32, i32
  }
  func.func @transform_3(%arg0: i32) -> (i32, i32) {
    %c0_i32 = arith.constant 0 : i32
    %c0_i32_0 = arith.constant 0 : i32
    return %c0_i32, %arg0 : i32, i32
  }
}

</mosaic_0001>

<bundles_post_ra>
// kernel: tpu_custom_call.1
= control target key start
LH: loop header
LB: loop body
LE: loop exit
PB: predicated region body
PF: predicated region fallthrough
CT: control target
= control target key end

     0   :  { %8 = vsyncpa [#allocation3], 0  ;;  %s786_s0 = inlined_call_operand.hbm [shape: f32[4,128,128], index: 0, kind: input, shape index: {}]   ;;  %s787_s1 = inlined_call_operand.vmem [shape: f32[8,128], index: 1, kind: input, shape index: {}]   ;;  %s788_s2 = inlined_call_operand.vmem [shape: f32[8,1], index: 2, kind: input, shape index: {}]   ;;  %s789_s3 = inlined_call_operand.hbm [shape: f32[8,128], index: 3, kind: output, shape index: {}]  }
   0x1   :  { %9 = vsyncpa [#allocation4], 0  ;;  %s669_s12 = smov [#allocation2]  }
   0x2   :  { %s15_s13 = sshll.u32 %s669_s12, 4  ;;  %s16_s13 = int_to_ptr.vmem [resolvable:$true] %s15_s13 }
   0x3   :  { %s633_s14 = scalar_lea.vmem %s16_s13, 8192  ;;  %p638_p1 = scmp.lt.s32.totalorder %s16_s13, %s16_s13 }
   0x4   :  { %p634_p0 = scmp.ne.s32.totalorder %s16_s13, %s633_s14  ;;  %p639_p2 = scmp.lt.s32.totalorder %s633_s14, %s633_s14 }
   0x6   :  { %p640_p3 = por %p639_p2, %p638_p1 }
   0x8   :  { %p641_p4 = pnand %p640_p3, %p634_p0 }
   0xa   :  { %644 = shalt.err (!%p641_p4)
}
   0xb   :  { %s670_s15 = smov 128   ;;  %s671_s16 = smov 8  }
   0xc   :  { %21 = dma.hbm_to_vmem [thread:$0]  %s786_s0, 8192, %s16_s13, [#allocation3], %s670_s15, %s670_s15, %s671_s16  }
   0xd   :  { %665 = dma.done.wait [#allocation3], 8192  }
   0xe   :  { %666 = vsyncadd [#allocation3], 4294959104  ;;  %v672_v0 = vmov 0.0   ;;  %vm673_vm0 = vmmov 0   ;;  %v674_v1 = vmov 0   ;;  %v45_v2 = vld [vmem:[#allocation2 + $0x78] sm:$0xff] }
   0xf   :  { %475 = vmatprep.subr.mxu0 %v672_v0  ;;  %510 = vmatprep.subr.mxu1 %v672_v0  ;;  %v132_v3 = vld [vmem:[#allocation2 + $0xf8] sm:$0xff]  ;;  %v44_v4 = vld [vmem:[#allocation2 + $0x70] sm:$0xff]  ;;  %v43_v6 = vld [vmem:[#allocation2 + $0x68] sm:$0xff] }
  0x10   :  { %507 = vmatprep.mubr.msk.f32.mxu0 %vm673_vm0, %v672_v0  ;;  %542 = vmatprep.mubr.msk.f32.mxu1 %vm673_vm0, %v672_v0  ;;  %v131_v5 = vld [vmem:[#allocation2 + $0xf0] sm:$0xff]  ;;  %v130_v7 = vld [vmem:[#allocation2 + $0xe8] sm:$0xff]  ;;  %v42_v8 = vld [vmem:[#allocation2 + $0x60] sm:$0xff] }
  0x11   :  { %622 = vset.pattern.permute.xlu0 %v674_v1  ;;  %476 = vmatpush3.msra.mxu0 %v45_v2  ;;  %v129_v9 = vld [vmem:[#allocation2 + $0xe0] sm:$0xff]  ;;  %v41_v10 = vld [vmem:[#allocation2 + $0x58] sm:$0xff]  ;;  %v40_v12 = vld [vmem:[#allocation2 + $0x50] sm:$0xff] }
  0x12   :  { %511 = vmatpush3.msra.mxu1 %v132_v3  ;;  %477 = vmatprep.subr.mxu0 %v672_v0  ;;  %v128_v11 = vld [vmem:[#allocation2 + $0xd8] sm:$0xff]  ;;  %v127_v13 = vld [vmem:[#allocation2 + $0xd0] sm:$0xff]  ;;  %v39_v14 = vld [vmem:[#allocation2 + $0x48] sm:$0xff] }
  0x13   :  { %512 = vmatprep.subr.mxu1 %v672_v0  ;;  %478 = vmatpush3.msra.mxu0 %v44_v4  ;;  %v126_v15 = vld [vmem:[#allocation2 + $0xc8] sm:$0xff]  ;;  %v38_v16 = vld [vmem:[#allocation2 + $0x40] sm:$0xff]  ;;  %v37_v18 = vld [vmem:[#allocation2 + $0x38] sm:$0xff] }
  0x14   :  { %513 = vmatpush3.msra.mxu1 %v131_v5  ;;  %479 = vmatprep.subr.mxu0 %v672_v0  ;;  %v125_v17 = vld [vmem:[#allocation2 + $0xc0] sm:$0xff]  ;;  %v124_v19 = vld [vmem:[#allocation2 + $0xb8] sm:$0xff]  ;;  %v36_v20 = vld [vmem:[#allocation2 + $0x30] sm:$0xff] }
  0x15   :  { %514 = vmatprep.subr.mxu1 %v672_v0  ;;  %480 = vmatpush3.msra.mxu0 %v43_v6  ;;  %v123_v21 = vld [vmem:[#allocation2 + $0xb0] sm:$0xff]  ;;  %v35_v22 = vld [vmem:[#allocation2 + $0x28] sm:$0xff]  ;;  %v34_v24 = vld [vmem:[#allocation2 + $0x20] sm:$0xff] }
  0x16   :  { %515 = vmatpush3.msra.mxu1 %v130_v7  ;;  %481 = vmatprep.subr.mxu0 %v672_v0  ;;  %v122_v23 = vld [vmem:[#allocation2 + $0xa8] sm:$0xff]  ;;  %v121_v25 = vld [vmem:[#allocation2 + $0xa0] sm:$0xff]  ;;  %v33_v26 = vld [vmem:[#allocation2 + $0x18] sm:$0xff] }
  0x17   :  { %516 = vmatprep.subr.mxu1 %v672_v0  ;;  %482 = vmatpush3.msra.mxu0 %v42_v8  ;;  %v120_v27 = vld [vmem:[#allocation2 + $0x98] sm:$0xff]  ;;  %v32_v28 = vld [vmem:[#allocation2 + $0x10] sm:$0xff]  ;;  %v31_v30 = vld [vmem:[#allocation2 + $0x8] sm:$0xff] }
  0x18   :  { %517 = vmatpush3.msra.mxu1 %v129_v9  ;;  %483 = vmatprep.subr.mxu0 %v672_v0  ;;  %v119_v29 = vld [vmem:[#allocation2 + $0x90] sm:$0xff]  ;;  %v118_v31 = vld [vmem:[#allocation2 + $0x88] sm:$0xff]  ;;  %v30_v32 = vld [vmem:[#allocation2] sm:$0xff] }
  0x19   :  { %518 = vmatprep.subr.mxu1 %v672_v0  ;;  %484 = vmatpush3.msra.mxu0 %v41_v10  ;;  %v117_v33 = vld [vmem:[#allocation2 + $0x80] sm:$0xff]  ;;  %v220_v35 = vld [vmem:[#allocation2 + $0x178] sm:$0xff]  ;;  %v219_v37 = vld [vmem:[#allocation2 + $0x170] sm:$0xff] }
  0x1a   :  { %519 = vmatpush3.msra.mxu1 %v128_v11  ;;  %485 = vmatprep.subr.mxu0 %v672_v0  ;;  %v736_v34 = vld [vmem:[%s787_s1] sm:$0xff]  ;;  %v308_v36 = vld [vmem:[#allocation2 + $0x1f8] sm:$0xff]  ;;  %v307_v38 = vld [vmem:[#allocation2 + $0x1f0] sm:$0xff] }
  0x1b   :  { %520 = vmatprep.subr.mxu1 %v672_v0  ;;  %486 = vmatpush3.msra.mxu0 %v40_v12  ;;  %v218_v39 = vld [vmem:[#allocation2 + $0x168] sm:$0xff]  ;;  %v217_v41 = vld [vmem:[#allocation2 + $0x160] sm:$0xff]  ;;  %v216_v43 = vld [vmem:[#allocation2 + $0x158] sm:$0xff] }
  0x1c   :  { %521 = vmatpush3.msra.mxu1 %v127_v13  ;;  %487 = vmatprep.subr.mxu0 %v672_v0  ;;  %v306_v40 = vld [vmem:[#allocation2 + $0x1e8] sm:$0xff]  ;;  %v305_v42 = vld [vmem:[#allocation2 + $0x1e0] sm:$0xff]  ;;  %v304_v44 = vld [vmem:[#allocation2 + $0x1d8] sm:$0xff] }
  0x1d   :  { %522 = vmatprep.subr.mxu1 %v672_v0  ;;  %488 = vmatpush3.msra.mxu0 %v39_v14  ;;  %v215_v45 = vld [vmem:[#allocation2 + $0x150] sm:$0xff]  ;;  %v214_v47 = vld [vmem:[#allocation2 + $0x148] sm:$0xff]  ;;  %v213_v49 = vld [vmem:[#allocation2 + $0x140] sm:$0xff] }
  0x1e   :  { %523 = vmatpush3.msra.mxu1 %v126_v15  ;;  %489 = vmatprep.subr.mxu0 %v672_v0  ;;  %v303_v46 = vld [vmem:[#allocation2 + $0x1d0] sm:$0xff]  ;;  %v302_v48 = vld [vmem:[#allocation2 + $0x1c8] sm:$0xff]  ;;  %v301_v50 = vld [vmem:[#allocation2 + $0x1c0] sm:$0xff] }
  0x1f   :  { %524 = vmatprep.subr.mxu1 %v672_v0  ;;  %490 = vmatpush3.msra.mxu0 %v38_v16  ;;  %v212_v51 = vld [vmem:[#allocation2 + $0x138] sm:$0xff]  ;;  %v211_v53 = vld [vmem:[#allocation2 + $0x130] sm:$0xff]  ;;  %v210_v55 = vld [vmem:[#allocation2 + $0x128] sm:$0xff] }
  0x20   :  { %525 = vmatpush3.msra.mxu1 %v125_v17  ;;  %491 = vmatprep.subr.mxu0 %v672_v0  ;;  %v300_v52 = vld [vmem:[#allocation2 + $0x1b8] sm:$0xff]  ;;  %v299_v54 = vld [vmem:[#allocation2 + $0x1b0] sm:$0xff]  ;;  %v298_v56 = vld [vmem:[#allocation2 + $0x1a8] sm:$0xff] }
  0x21   :  { %526 = vmatprep.subr.mxu1 %v672_v0  ;;  %492 = vmatpush3.msra.mxu0 %v37_v18  ;;  %v209_v57 = vld [vmem:[#allocation2 + $0x120] sm:$0xff]  ;;  %v208_v59 = vld [vmem:[#allocation2 + $0x118] sm:$0xff]  ;;  %v207_v61 = vld [vmem:[#allocation2 + $0x110] sm:$0xff] }
  0x22   :  { %527 = vmatpush3.msra.mxu1 %v124_v19  ;;  %493 = vmatprep.subr.mxu0 %v672_v0  ;;  %v297_v58 = vld [vmem:[#allocation2 + $0x1a0] sm:$0xff]  ;;  %v296_v60 = vld [vmem:[#allocation2 + $0x198] sm:$0xff]  ;;  %v295_v62 = vld [vmem:[#allocation2 + $0x190] sm:$0xff] }
  0x23   :  { %528 = vmatprep.subr.mxu1 %v672_v0  ;;  %494 = vmatpush3.msra.mxu0 %v36_v20  ;;  %v206_v63 = vld [vmem:[#allocation2 + $0x108] sm:$0xff]  ;;  %v205_v2 = vld [vmem:[#allocation2 + $0x100] sm:$0xff] }
  0x24   :  { %529 = vmatpush3.msra.mxu1 %v123_v21  ;;  %495 = vmatprep.subr.mxu0 %v672_v0  ;;  %v294_v1 = vld [vmem:[#allocation2 + $0x188] sm:$0xff]  ;;  %v293_v3 = vld [vmem:[#allocation2 + $0x180] sm:$0xff] }
  0x25   :  { %530 = vmatprep.subr.mxu1 %v672_v0  ;;  %496 = vmatpush3.msra.mxu0 %v35_v22  ;;  %v380_v4 = vld [vmem:[%s788_s2] sm:$0xff]  ;;  %s675_s2 = smov [#allocation5]  }
  0x26   :  { %531 = vmatpush3.msra.mxu1 %v122_v23  ;;  %497 = vmatprep.subr.mxu0 %v672_v0  ;;  %s398_s21 = sshll.u32 %s675_s2, 4  ;;  %s399_s21 = int_to_ptr.vmem [resolvable:$true] %s398_s21 }
  0x27   :  { %532 = vmatprep.subr.mxu1 %v672_v0  ;;  %498 = vmatpush3.msra.mxu0 %v34_v24  ;;  %s645_s22 = scalar_lea.vmem %s399_s21, 128  ;;  %p650_p6 = scmp.lt.s32.totalorder %s399_s21, %s399_s21 }
  0x28   :  { %533 = vmatpush3.msra.mxu1 %v121_v25  ;;  %499 = vmatprep.subr.mxu0 %v672_v0  ;;  %p646_p5 = scmp.ne.s32.totalorder %s399_s21, %s645_s22  ;;  %p651_p7 = scmp.lt.s32.totalorder %s645_s22, %s645_s22 }
  0x29   :  { %534 = vmatprep.subr.mxu1 %v672_v0  ;;  %500 = vmatpush3.msra.mxu0 %v33_v26 }
  0x2a   :  { %535 = vmatpush3.msra.mxu1 %v120_v27  ;;  %501 = vmatprep.subr.mxu0 %v672_v0  ;;  %p652_p8 = por %p651_p7, %p650_p6 }
  0x2b   :  { %536 = vmatprep.subr.mxu1 %v672_v0  ;;  %502 = vmatpush3.msra.mxu0 %v32_v28 }
  0x2c   :  { %537 = vmatpush3.msra.mxu1 %v119_v29  ;;  %503 = vmatprep.subr.mxu0 %v672_v0  ;;  %p653_p9 = pnand %p652_p8, %p646_p5 }
  0x2d   :  { %538 = vmatprep.subr.mxu1 %v672_v0  ;;  %504 = vmatpush3.msra.mxu0 %v31_v30 }
  0x2e   :  { %539 = vmatpush3.msra.mxu1 %v118_v31  ;;  %505 = vmatprep.subr.mxu0 %v672_v0 }
  0x2f   :  { %540 = vmatprep.subr.mxu1 %v672_v0  ;;  %506 = vmatpush3.msra.mxu0 %v30_v32 }
  0x30   :  { %541 = vmatpush3.msra.mxu1 %v117_v33  ;;  %508 = vmatmul.mubr.f32.vlgmr.msra.gmra.mxu0 %v736_v34 }
  0x31   :  { %545 = vmatprep.subr.mxu0 %v672_v0  ;;  %580 = vmatprep.subr.mxu1 %v672_v0 }
  0x32   :  { %543 = vmatmul.mubr.f32.vlgmr.msra.gmra.mxu1 %v736_v34  ;;  %546 = vmatpush3.msra.mxu0 %v220_v35 }
  0x33   :  { %581 = vmatpush3.msra.mxu1 %v308_v36  ;;  %547 = vmatprep.subr.mxu0 %v672_v0 }
  0x34   :  { %582 = vmatprep.subr.mxu1 %v672_v0  ;;  %548 = vmatpush3.msra.mxu0 %v219_v37 }
  0x35   :  { %583 = vmatpush3.msra.mxu1 %v307_v38  ;;  %549 = vmatprep.subr.mxu0 %v672_v0 }
  0x36   :  { %584 = vmatprep.subr.mxu1 %v672_v0  ;;  %550 = vmatpush3.msra.mxu0 %v218_v39 }
  0x37   :  { %585 = vmatpush3.msra.mxu1 %v306_v40  ;;  %551 = vmatprep.subr.mxu0 %v672_v0 }
  0x38   :  { %586 = vmatprep.subr.mxu1 %v672_v0  ;;  %552 = vmatpush3.msra.mxu0 %v217_v41 }
  0x39   :  { %587 = vmatpush3.msra.mxu1 %v305_v42  ;;  %553 = vmatprep.subr.mxu0 %v672_v0 }
  0x3a   :  { %588 = vmatprep.subr.mxu1 %v672_v0  ;;  %554 = vmatpush3.msra.mxu0 %v216_v43 }
  0x3b   :  { %589 = vmatpush3.msra.mxu1 %v304_v44  ;;  %555 = vmatprep.subr.mxu0 %v672_v0 }
  0x3c   :  { %590 = vmatprep.subr.mxu1 %v672_v0  ;;  %556 = vmatpush3.msra.mxu0 %v215_v45 }
  0x3d   :  { %591 = vmatpush3.msra.mxu1 %v303_v46  ;;  %557 = vmatprep.subr.mxu0 %v672_v0 }
  0x3e   :  { %592 = vmatprep.subr.mxu1 %v672_v0  ;;  %558 = vmatpush3.msra.mxu0 %v214_v47 }
  0x3f   :  { %593 = vmatpush3.msra.mxu1 %v302_v48  ;;  %559 = vmatprep.subr.mxu0 %v672_v0 }
  0x40   :  { %594 = vmatprep.subr.mxu1 %v672_v0  ;;  %560 = vmatpush3.msra.mxu0 %v213_v49 }
  0x41   :  { %595 = vmatpush3.msra.mxu1 %v301_v50  ;;  %561 = vmatprep.subr.mxu0 %v672_v0 }
  0x42   :  { %596 = vmatprep.subr.mxu1 %v672_v0  ;;  %562 = vmatpush3.msra.mxu0 %v212_v51 }
  0x43   :  { %597 = vmatpush3.msra.mxu1 %v300_v52  ;;  %563 = vmatprep.subr.mxu0 %v672_v0 }
  0x44   :  { %598 = vmatprep.subr.mxu1 %v672_v0  ;;  %564 = vmatpush3.msra.mxu0 %v211_v53 }
  0x45   :  { %599 = vmatpush3.msra.mxu1 %v299_v54  ;;  %565 = vmatprep.subr.mxu0 %v672_v0 }
  0x46   :  { %600 = vmatprep.subr.mxu1 %v672_v0  ;;  %566 = vmatpush3.msra.mxu0 %v210_v55 }
  0x47   :  { %601 = vmatpush3.msra.mxu1 %v298_v56  ;;  %567 = vmatprep.subr.mxu0 %v672_v0 }
  0x48   :  { %602 = vmatprep.subr.mxu1 %v672_v0  ;;  %568 = vmatpush3.msra.mxu0 %v209_v57 }
  0x49   :  { %603 = vmatpush3.msra.mxu1 %v297_v58  ;;  %569 = vmatprep.subr.mxu0 %v672_v0 }
  0x4a   :  { %604 = vmatprep.subr.mxu1 %v672_v0  ;;  %570 = vmatpush3.msra.mxu0 %v208_v59 }
  0x4b   :  { %605 = vmatpush3.msra.mxu1 %v296_v60  ;;  %571 = vmatprep.subr.mxu0 %v672_v0 }
  0x4c   :  { %606 = vmatprep.subr.mxu1 %v672_v0  ;;  %572 = vmatpush3.msra.mxu0 %v207_v61 }
  0x4d   :  { %607 = vmatpush3.msra.mxu1 %v295_v62  ;;  %573 = vmatprep.subr.mxu0 %v672_v0 }
  0x4e   :  { %608 = vmatprep.subr.mxu1 %v672_v0  ;;  %574 = vmatpush3.msra.mxu0 %v206_v63 }
  0x4f   :  { %609 = vmatpush3.msra.mxu1 %v294_v1  ;;  %575 = vmatprep.subr.mxu0 %v672_v0 }
  0x50   :  { %610 = vmatprep.subr.mxu1 %v672_v0  ;;  %576 = vmatpush3.msra.mxu0 %v205_v2 }
  0x51   :  { %577 = vmatprep.mubr.msk.f32.mxu0 %vm673_vm0, %v672_v0  ;;  %611 = vmatpush3.msra.mxu1 %v293_v3 }
  0x52   :  { %612 = vmatprep.mubr.msk.f32.mxu1 %vm673_vm0, %v672_v0  ;;  %578 = vmatmul.mubr.f32.vlgmr.msra.gmra.mxu0 %v736_v34 }
  0x53   :  { %613 = vmatmul.mubr.f32.vlgmr.msra.gmra.mxu1 %v736_v34  ;;  %383 = vperm.xlu0 %622, %v380_v4  }
  0xce   :  { %v384_v13 = vpop.permute.xlu0 %383 }
  0xf0   :  { %v112_v5 = vpop.f32.mrf.mxu0 }
  0xf2   :  { %v199_v6 = vpop.f32.mrf.mxu1  ;;  %v509_v7 = vpop.f32.mrf.mxu0 }
  0xf3   :  { %v203_v9 = vmax.f32 %v112_v5, %v199_v6 }
  0xf4   :  { %v544_v8 = vpop.f32.mrf.mxu1 }
 0x112   :  { %v287_v10 = vpop.f32.mrf.mxu0 }
 0x113   :  { %v375_v11 = vpop.f32.mrf.mxu1  ;;  %v291_v12 = vmax.f32 %v203_v9, %v287_v10 }
 0x114   :  { %v579_v14 = vpop.f32.mrf.mxu0 }
 0x115   :  { %v614_v15 = vpop.f32.mrf.mxu1  ;;  %v379_v16 = vmax.f32 %v291_v12, %v375_v11 }
 0x117   :  { %v386_v17 = vadd.f32 %v384_v13, %v379_v16 }
 0x119   :  { %v387_v18 = vmul.f32 0.5, %v386_v17 }
 0x11b   :  { %623 = vtanh.f32 %v387_v18 }
 0x128   :  { %v624_v0 = vpop.eup %623 }
 0x129   :  { %v389_v19 = vmul.f32 0.5, %v624_v0 }
 0x12b   :  { %v390_v20 = vadd.f32 0.5, %v389_v19 }
 0x12d   :  { %391 = vst [vmem:[#allocation5] sm:$0xff] %v390_v20 }
 0x12e   :  { %656 = shalt.err (!%p653_p9)
}
 0x12f   :  { %401 = dma.vmem_to_hbm [thread:$0]  %s399_s21, 128, %s789_s3, [#allocation4]  }
 0x130   :  { %667 = dma.done.wait [#allocation4], 128  }
 0x131   :  { %668 = vsyncadd [#allocation4], 4294967168 }
 0x132   :  { %405 = vsyncpa [#allocation3], 1 }
 0x133   :  { %406 = vsyncpa [#allocation4], 1 }

</bundles_post_ra>
